<compile_context>
chip_gen: v7x
topology: tpu7x:2x2x1
jax: 0.10.0
libtpu: 0.0.40
codegen_flags: <defaults>
</compile_context>

<pallas_src>
import functools
import math

import jax
import jax.numpy as jnp
from jax import lax
from jax.experimental import pallas as pl
from jax.experimental.pallas import tpu as pltpu


def _round_up(x, m):
    return ((x + m - 1) // m) * m


def _pad_to(a, shape):
    """Zero-pad `a` up to `shape` (no-op if already that shape)."""
    if tuple(a.shape) == tuple(shape):
        return a
    out = jnp.zeros(shape, a.dtype)
    return out.at[tuple(slice(0, s) for s in a.shape)].set(a)


# ---------------------------------------------------------------------------
# Residual 1: x + SelfAttention(LayerNorm(x), src_mask)   (one kernel per batch)
# ---------------------------------------------------------------------------
def attn_residual_kernel(x_ref, mask_ref, ab_ref, wqkv_ref, wo_ref, o_ref,
                         *, h, d_k, scale, eps, n):
    x = x_ref[0].astype(jnp.float32)                 # (S, D)
    m = mask_ref[0, 0]                               # (S, S)

    # --- LayerNorm (scalar alpha/bias, unbiased std, eps on std) ---
    mean = jnp.sum(x, axis=-1, keepdims=True) * (1.0 / n)
    diff = x - mean
    var = jnp.sum(diff * diff, axis=-1, keepdims=True) * (1.0 / (n - 1))
    std = jnp.sqrt(var)
    xn = (ab_ref[0] * diff / (std + eps) + ab_ref[1]).astype(wqkv_ref.dtype)

    # --- fused QKV projection: one wide matmul ---
    qkv = jnp.dot(xn, wqkv_ref[...], preferred_element_type=jnp.float32)  # (S, 3D)
    D = wo_ref.shape[0]
    q, k, v = qkv[:, :D], qkv[:, D:2 * D], qkv[:, 2 * D:]

    # --- per-head masked softmax attention, folded into the output proj ---
    out = jnp.zeros((x.shape[0], D), jnp.float32)
    for hh in range(h):                              # static unroll over heads
        sl = slice(hh * d_k, (hh + 1) * d_k)
        scores = jnp.dot(q[:, sl], k[:, sl].T,
                         preferred_element_type=jnp.float32) * scale
        scores = jnp.where(m == 0.0, -1e9, scores)   # masked_fill(mask==0, -1e9)
        scores = scores - jnp.max(scores, axis=-1, keepdims=True)
        p = jnp.exp(scores)
        attn = p / jnp.sum(p, axis=-1, keepdims=True)
        # attention dropout: inference identity
        ctx_h = jnp.dot(attn.astype(v.dtype), v[:, sl],
                        preferred_element_type=jnp.float32)
        # concat(heads) @ Wo  ==  sum_h  ctx_h @ Wo[h*d_k:(h+1)*d_k, :]
        out = out + jnp.dot(ctx_h.astype(wo_ref.dtype), wo_ref[sl, :],
                            preferred_element_type=jnp.float32)

    o_ref[0] = (x + out).astype(o_ref.dtype)         # residual add (dropout = id)


def attention_residual(x, mask, alpha, bias, wq, wk, wv, wo, *, h, eps=1e-6):
    B, S, d_model = x.shape
    assert d_model % h == 0, "d_model is not divisible by h"
    d_k = d_model // h
    wqkv = jnp.concatenate([wq, wk, wv], axis=1)     # (D, 3D) fused projection
    ab = jnp.stack([alpha.reshape(()), bias.reshape(())]).astype(jnp.float32)

    itemsize = jnp.dtype(x.dtype).itemsize
    flops = B * (8 * S * d_model * d_model + 4 * S * S * d_model)
    bytes_accessed = itemsize * (2 * x.size + mask.size + wqkv.size + wo.size)

    kernel = functools.partial(attn_residual_kernel, h=h, d_k=d_k,
                               scale=1.0 / math.sqrt(d_k), eps=eps, n=d_model)
    return pl.pallas_call(
        kernel,
        out_shape=jax.ShapeDtypeStruct((B, S, d_model), x.dtype),
        grid_spec=pltpu.PrefetchScalarGridSpec(
            num_scalar_prefetch=0,
            grid=(B,),
            in_specs=[
                pl.BlockSpec((1, S, d_model), lambda b: (b, 0, 0)),
                pl.BlockSpec((1, 1, S, S), lambda b: (b, 0, 0, 0)),
                pl.BlockSpec(memory_space=pltpu.MemorySpace.SMEM),   # (alpha, bias)
                pl.BlockSpec((d_model, 3 * d_model), lambda b: (0, 0)),
                pl.BlockSpec((d_model, d_model), lambda b: (0, 0)),
            ],
            out_specs=pl.BlockSpec((1, S, d_model), lambda b: (b, 0, 0)),
        ),
        compiler_params=pltpu.CompilerParams(
            dimension_semantics=("parallel",)),
        cost_estimate=pl.CostEstimate(flops=flops,
                                      transcendentals=B * h * S * S,
                                      bytes_accessed=bytes_accessed),
    )(x, mask, ab, wqkv, wo)


# ---------------------------------------------------------------------------
# Residual 2: x + Linear2(ReLU(Linear1(LayerNorm(x))))
# Grid = (row tiles [parallel], d_ff tiles [arbitrary, reduction]).
# LN is computed once per row tile (k==0) into a VMEM scratch; an f32 VMEM
# accumulator carries the Linear2 partial sums; bias + residual at the last k.
# ---------------------------------------------------------------------------
def ffn_residual_kernel(x_ref, ab_ref, w1_ref, b1_ref, w2_ref, b2_ref, o_ref,
                        acc_ref, xn_ref, *, eps, n):
    k = pl.program_id(1)

    @pl.when(k == 0)
    def _init():
        acc_ref[...] = jnp.zeros_like(acc_ref)
        xf = x_ref[...].astype(jnp.float32)
        cols = lax.broadcasted_iota(jnp.int32, xf.shape, 1)
        valid = cols < n                                  # mask padded model dims
        mean = jnp.sum(jnp.where(valid, xf, 0.0), axis=-1, keepdims=True) * (1.0 / n)
        diff = jnp.where(valid, xf - mean, 0.0)
        var = jnp.sum(diff * diff, axis=-1, keepdims=True) * (1.0 / (n - 1))
        std = jnp.sqrt(var)
        xn_ref[...] = (ab_ref[0] * diff / (std + eps) + ab_ref[1]).astype(xn_ref.dtype)

    # Linear1 on this d_ff tile (native-dtype operands, f32 accumulation).
    hid = jnp.dot(xn_ref[...], w1_ref[...], preferred_element_type=jnp.float32)
    hid = jnp.maximum(hid + b1_ref[...].astype(jnp.float32), 0.0)   # bias + ReLU
    # dropout: inference mode -> identity
    # Linear2 partial sum over this d_ff tile into the f32 accumulator.
    acc_ref[...] += jnp.dot(hid.astype(w2_ref.dtype), w2_ref[...],
                            preferred_element_type=jnp.float32)

    @pl.when(k == pl.num_programs(1) - 1)
    def _finalize():
        o_ref[...] = (acc_ref[...] + b2_ref[...].astype(jnp.float32)
                      + x_ref[...].astype(jnp.float32)).astype(o_ref.dtype)


def ffn_residual(x, alpha, bias, w1, b1, w2, b2, *, eps=1e-6, tm=256, tff=512):
    """x: (B,S,d_model). w1: (d_model,d_ff), b1: (d_ff,), w2: (d_ff,d_model),
    b2: (d_model,). Returns x + FFN(LN(x))."""
    B, S, d_model = x.shape
    d_ff = w1.shape[1]
    M = B * S

    # Large row tiles; shrink for tiny inputs; zero-pad M so no divisibility
    # asserts are needed.  Lane-dense (multiple-of-128) model dim.
    tm = min(tm, _round_up(M, 16))
    M_p = _round_up(M, tm)
    d_model_p = _round_up(d_model, 128)
    tff = min(tff, _round_up(d_ff, 128))
    d_ff_p = _round_up(d_ff, tff)

    x_p = _pad_to(x.reshape(M, d_model), (M_p, d_model_p))
    w1_p = _pad_to(w1, (d_model_p, d_ff_p))
    b1_p = _pad_to(b1.reshape(1, d_ff), (1, d_ff_p))
    w2_p = _pad_to(w2, (d_ff_p, d_model_p))
    b2_p = _pad_to(b2.reshape(1, d_model), (1, d_model_p))
    ab = jnp.stack([alpha.reshape(()), bias.reshape(())]).astype(jnp.float32)

    itemsize = jnp.dtype(x.dtype).itemsize
    flops = 4 * M * d_model * d_ff
    bytes_accessed = itemsize * (x_p.size + w1_p.size + w2_p.size
                                 + b1_p.size + b2_p.size + M_p * d_model_p)

    out = pl.pallas_call(
        functools.partial(ffn_residual_kernel, eps=eps, n=d_model),
        out_shape=jax.ShapeDtypeStruct((M_p, d_model_p), x.dtype),
        grid_spec=pltpu.PrefetchScalarGridSpec(
            num_scalar_prefetch=0,
            grid=(M_p // tm, d_ff_p // tff),
            in_specs=[
                pl.BlockSpec((tm, d_model_p), lambda i, k: (i, 0)),   # x rows (resident)
                pl.BlockSpec(memory_space=pltpu.MemorySpace.SMEM),    # (alpha, bias)
                pl.BlockSpec((d_model_p, tff), lambda i, k: (0, k)),  # W1 tile
                pl.BlockSpec((1, tff), lambda i, k: (0, k)),          # b1 tile
                pl.BlockSpec((tff, d_model_p), lambda i, k: (k, 0)),  # W2 tile
                pl.BlockSpec((1, d_model_p), lambda i, k: (0, 0)),    # b2
            ],
            out_specs=pl.BlockSpec((tm, d_model_p), lambda i, k: (i, 0)),
            scratch_shapes=[pltpu.VMEM((tm, d_model_p), jnp.float32),   # acc
                            pltpu.VMEM((tm, d_model_p), x.dtype)],      # LN(x) cache
        ),
        compiler_params=pltpu.CompilerParams(
            dimension_semantics=("parallel", "arbitrary"),
            vmem_limit_bytes=48 * 1024 * 1024),
        cost_estimate=pl.CostEstimate(flops=flops, transcendentals=0,
                                      bytes_accessed=bytes_accessed),
    )(x_p, ab, w1_p, b1_p, w2_p, b2_p)
    return out[:M, :d_model].reshape(B, S, d_model)


# ---------------------------------------------------------------------------
# EncoderBlock forward (pre-norm residual connections; dropout = identity)
# ---------------------------------------------------------------------------
def encoder_block(x, src_mask, params, *, h, eps=1e-6):
    x = attention_residual(x, src_mask, params["ln1_alpha"], params["ln1_bias"],
                           params["wq"], params["wk"], params["wv"], params["wo"],
                           h=h, eps=eps)
    x = ffn_residual(x, params["ln2_alpha"], params["ln2_bias"],
                     params["w1"], params["b1"], params["w2"], params["b2"],
                     eps=eps)
    return x


# ---------------------------------------------------------------------------
# Pure-JAX reference
# ---------------------------------------------------------------------------
def reference_encoder_block(x, mask, p, *, h, eps=1e-6):
    def ln(z, alpha, bias):
        mean = z.mean(axis=-1, keepdims=True)
        std = jnp.std(z, axis=-1, keepdims=True, ddof=1)
        return alpha * (z - mean) / (std + eps) + bias

    B, S, D = x.shape
    d_k = D // h
    xn = ln(x, p["ln1_alpha"], p["ln1_bias"])
    q = xn @ p["wq"]; k = xn @ p["wk"]; v = xn @ p["wv"]
    qh = q.reshape(B, S, h, d_k).transpose(0, 2, 1, 3)
    kh = k.reshape(B, S, h, d_k).transpose(0, 2, 1, 3)
    vh = v.reshape(B, S, h, d_k).transpose(0, 2, 1, 3)
    scores = (qh @ kh.transpose(0, 1, 3, 2)) / math.sqrt(d_k)
    scores = jnp.where(mask == 0, -1e9, scores)
    attn = jax.nn.softmax(scores, axis=-1)
    ctx = (attn @ vh).transpose(0, 2, 1, 3).reshape(B, S, D)
    x = x + ctx @ p["wo"]
    xn = ln(x, p["ln2_alpha"], p["ln2_bias"])
    ff = jnp.maximum(xn @ p["w1"] + p["b1"], 0.0) @ p["w2"] + p["b2"]
    return x + ff


if __name__ == "__main__":
    batch, seq, d_model, h, d_ff = 2, 8, 32, 4, 64
    dropout_p = 0.1   # inference: identity
    eps = 1e-6

    key = jax.random.PRNGKey(0)
    keys = jax.random.split(key, 9)
    x = jax.random.normal(keys[0], (batch, seq, d_model), dtype=jnp.float32)

    def lin_init(k, fan_in, shape):
        bound = 1.0 / math.sqrt(fan_in)
        return jax.random.uniform(k, shape, jnp.float32, -bound, bound)

    params = {
        "wq": lin_init(keys[1], d_model, (d_model, d_model)),
        "wk": lin_init(keys[2], d_model, (d_model, d_model)),
        "wv": lin_init(keys[3], d_model, (d_model, d_model)),
        "wo": lin_init(keys[4], d_model, (d_model, d_model)),
        "w1": lin_init(keys[5], d_model, (d_model, d_ff)),
        "b1": lin_init(keys[6], d_model, (d_ff,)),
        "w2": lin_init(keys[7], d_ff, (d_ff, d_model)),
        "b2": lin_init(keys[8], d_ff, (d_model,)),
        "ln1_alpha": jnp.ones((1,), jnp.float32),
        "ln1_bias": jnp.zeros((1,), jnp.float32),
        "ln2_alpha": jnp.ones((1,), jnp.float32),
        "ln2_bias": jnp.zeros((1,), jnp.float32),
    }

    # Padding-style src_mask: batch 0 sees all 8 keys, batch 1 only the first 6.
    lengths = jnp.array([seq, seq - 2])
    key_pos = jnp.arange(seq)
    mask_row = (key_pos[None, :] < lengths[:, None]).astype(jnp.float32)   # (B, S)
    src_mask = jnp.broadcast_to(mask_row[:, None, None, :],
                                (batch, 1, seq, seq)) * jnp.ones(
                                    (batch, 1, seq, seq), jnp.float32)

    out = encoder_block(x, src_mask, params, h=h, eps=eps)
    out = jax.block_until_ready(out)

    ref = reference_encoder_block(x, src_mask, params, h=h, eps=eps)
    assert out.shape == (batch, seq, d_model)
    assert jnp.allclose(out, ref, atol=1e-4, rtol=1e-4), (
        "mismatch vs reference, max abs err = "
        + str(float(jnp.max(jnp.abs(out - ref)))))

    print("KERNEL_OK")
</pallas_src>

<mosaic_0001>
module attributes {stable_mosaic.version = 11 : i64} {
  func.func @attn_residual_kernel(%arg0: i32, %arg1: memref<1x8x32xf32, #tpu.memory_space<vmem>>, %arg2: memref<1x1x8x8xf32, #tpu.memory_space<vmem>>, %arg3: memref<2xf32, #tpu.memory_space<smem>>, %arg4: memref<32x96xf32, #tpu.memory_space<vmem>>, %arg5: memref<32x32xf32, #tpu.memory_space<vmem>>, %arg6: memref<1x8x32xf32, #tpu.memory_space<vmem>>) attributes {dimension_semantics = [#tpu.dimension_semantics<parallel>], iteration_bounds = array<i64: 2>, scalar_prefetch = 0 : i64, scratch_operands = 0 : i64, tpu.core_type = #tpu.core_type<tc>, window_params = [{transform_indices = @transform_0, window_bounds = array<i64: 1, 8, 32>}, {transform_indices = @transform_1, window_bounds = array<i64: 1, 1, 8, 8>}, {transform_indices = @transform_2, window_bounds = array<i64: 2>}, {pipeline_mode = #tpu.pipeline_mode<synchronous>, transform_indices = @transform_3, window_bounds = array<i64: 32, 96>}, {pipeline_mode = #tpu.pipeline_mode<synchronous>, transform_indices = @transform_4, window_bounds = array<i64: 32, 32>}, {transform_indices = @transform_5, window_bounds = array<i64: 1, 8, 32>}]} {
    %c0 = arith.constant 0 : index
    %c0_0 = arith.constant 0 : index
    %c0_1 = arith.constant 0 : index
    %0 = vector.load %arg1[%c0, %c0_0, %c0_1] : memref<1x8x32xf32, #tpu.memory_space<vmem>>, vector<1x8x32xf32>
    %1 = vector.shape_cast %0 : vector<1x8x32xf32> to vector<8x32xf32>
    %c0_2 = arith.constant 0 : index
    %c0_3 = arith.constant 0 : index
    %c0_4 = arith.constant 0 : index
    %c0_5 = arith.constant 0 : index
    %2 = vector.load %arg2[%c0_2, %c0_3, %c0_4, %c0_5] : memref<1x1x8x8xf32, #tpu.memory_space<vmem>>, vector<1x1x8x8xf32>
    %3 = vector.shape_cast %2 : vector<1x1x8x8xf32> to vector<8x8xf32>
    %cst = arith.constant dense<0.000000e+00> : vector<8xf32>
    %4 = vector.multi_reduction <add>, %1, %cst [1] : vector<8x32xf32> to vector<8xf32>
    %5 = vector.shape_cast %4 : vector<8xf32> to vector<8x1xf32>
    %cst_6 = arith.constant 3.125000e-02 : f32
    %6 = vector.broadcast %cst_6 : f32 to vector<8x1xf32>
    %7 = arith.mulf %5, %6 : vector<8x1xf32>
    %8 = vector.broadcast %7 : vector<8x1xf32> to vector<8x32xf32>
    %9 = arith.subf %1, %8 : vector<8x32xf32>
    %10 = arith.mulf %9, %9 : vector<8x32xf32>
    %cst_7 = arith.constant dense<0.000000e+00> : vector<8xf32>
    %11 = vector.multi_reduction <add>, %10, %cst_7 [1] : vector<8x32xf32> to vector<8xf32>
    %12 = vector.shape_cast %11 : vector<8xf32> to vector<8x1xf32>
    %cst_8 = arith.constant 0.0322580636 : f32
    %13 = vector.broadcast %cst_8 : f32 to vector<8x1xf32>
    %14 = arith.mulf %12, %13 : vector<8x1xf32>
    %15 = math.sqrt %14 : vector<8x1xf32>
    %c0_9 = arith.constant 0 : index
    %16 = memref.load %arg3[%c0_9] : memref<2xf32, #tpu.memory_space<smem>>
    %17 = vector.broadcast %16 : f32 to vector<8x32xf32>
    %18 = arith.mulf %17, %9 : vector<8x32xf32>
    %cst_10 = arith.constant 9.99999997E-7 : f32
    %19 = vector.broadcast %cst_10 : f32 to vector<8x1xf32>
    %20 = arith.addf %15, %19 : vector<8x1xf32>
    %21 = vector.broadcast %20 : vector<8x1xf32> to vector<8x32xf32>
    %22 = arith.divf %18, %21 : vector<8x32xf32>
    %c1 = arith.constant 1 : index
    %23 = memref.load %arg3[%c1] : memref<2xf32, #tpu.memory_space<smem>>
    %24 = vector.broadcast %23 : f32 to vector<8x32xf32>
    %25 = arith.addf %22, %24 : vector<8x32xf32>
    %c0_11 = arith.constant 0 : index
    %c0_12 = arith.constant 0 : index
    %26 = vector.load %arg4[%c0_11, %c0_12] : memref<32x96xf32, #tpu.memory_space<vmem>>, vector<32x96xf32>
    %cst_13 = arith.constant dense<0.000000e+00> : vector<8x96xf32>
    %27 = tpu.matmul %25, %26, %cst_13 {dimension_numbers = #tpu.dot_dimension_numbers<[1], [0], [0], [1], [0, 0, 1, 1], [], []>} : vector<8x32xf32>, vector<32x96xf32>, vector<8x96xf32> -> vector<8x96xf32>
    %28 = vector.extract_strided_slice %27 {offsets = [0, 0], sizes = [8, 32], strides = [1, 1]} : vector<8x96xf32> to vector<8x32xf32>
    %29 = vector.extract_strided_slice %27 {offsets = [0, 32], sizes = [8, 32], strides = [1, 1]} : vector<8x96xf32> to vector<8x32xf32>
    %30 = vector.extract_strided_slice %27 {offsets = [0, 64], sizes = [8, 32], strides = [1, 1]} : vector<8x96xf32> to vector<8x32xf32>
    %cst_14 = arith.constant 0.000000e+00 : f32
    %31 = vector.broadcast %cst_14 : f32 to vector<8x32xf32>
    %32 = vector.extract_strided_slice %28 {offsets = [0, 0], sizes = [8, 8], strides = [1, 1]} : vector<8x32xf32> to vector<8x8xf32>
    %33 = vector.extract_strided_slice %29 {offsets = [0, 0], sizes = [8, 8], strides = [1, 1]} : vector<8x32xf32> to vector<8x8xf32>
    %34 = tpu.transpose %33, [1, 0] : vector<8x8xf32> -> vector<8x8xf32>
    %cst_15 = arith.constant dense<0.000000e+00> : vector<8x8xf32>
    %35 = tpu.matmul %32, %34, %cst_15 {dimension_numbers = #tpu.dot_dimension_numbers<[1], [0], [0], [1], [0, 0, 1, 1], [], []>} : vector<8x8xf32>, vector<8x8xf32>, vector<8x8xf32> -> vector<8x8xf32>
    %cst_16 = arith.constant 0.353553385 : f32
    %36 = vector.broadcast %cst_16 : f32 to vector<8x8xf32>
    %37 = arith.mulf %35, %36 : vector<8x8xf32>
    %cst_17 = arith.constant 0.000000e+00 : f32
    %38 = vector.broadcast %cst_17 : f32 to vector<8x8xf32>
    %39 = arith.cmpf oeq, %3, %38 : vector<8x8xf32>
    %cst_18 = arith.constant -1.000000e+09 : f32
    %40 = vector.broadcast %cst_18 : f32 to vector<8x8xf32>
    %41 = arith.select %39, %40, %37 : vector<8x8xi1>, vector<8x8xf32>
    %cst_19 = arith.constant dense<0xFF800000> : vector<8xf32>
    %42 = vector.multi_reduction <maximumf>, %41, %cst_19 [1] : vector<8x8xf32> to vector<8xf32>
    %43 = vector.shape_cast %42 : vector<8xf32> to vector<8x1xf32>
    %44 = vector.broadcast %43 : vector<8x1xf32> to vector<8x8xf32>
    %45 = arith.subf %41, %44 : vector<8x8xf32>
    %46 = math.exp %45 : vector<8x8xf32>
    %cst_20 = arith.constant dense<0.000000e+00> : vector<8xf32>
    %47 = vector.multi_reduction <add>, %46, %cst_20 [1] : vector<8x8xf32> to vector<8xf32>
    %48 = vector.shape_cast %47 : vector<8xf32> to vector<8x1xf32>
    %49 = vector.broadcast %48 : vector<8x1xf32> to vector<8x8xf32>
    %50 = arith.divf %46, %49 : vector<8x8xf32>
    %51 = vector.extract_strided_slice %30 {offsets = [0, 0], sizes = [8, 8], strides = [1, 1]} : vector<8x32xf32> to vector<8x8xf32>
    %cst_21 = arith.constant dense<0.000000e+00> : vector<8x8xf32>
    %52 = tpu.matmul %50, %51, %cst_21 {dimension_numbers = #tpu.dot_dimension_numbers<[1], [0], [0], [1], [0, 0, 1, 1], [], []>} : vector<8x8xf32>, vector<8x8xf32>, vector<8x8xf32> -> vector<8x8xf32>
    %c0_22 = arith.constant 0 : index
    %c0_23 = arith.constant 0 : index
    %53 = vector.load %arg5[%c0_22, %c0_23] : memref<32x32xf32, #tpu.memory_space<vmem>>, vector<8x32xf32>
    %cst_24 = arith.constant dense<0.000000e+00> : vector<8x32xf32>
    %54 = tpu.matmul %52, %53, %cst_24 {dimension_numbers = #tpu.dot_dimension_numbers<[1], [0], [0], [1], [0, 0, 1, 1], [], []>} : vector<8x8xf32>, vector<8x32xf32>, vector<8x32xf32> -> vector<8x32xf32>
    %55 = arith.addf %31, %54 : vector<8x32xf32>
    %56 = vector.extract_strided_slice %28 {offsets = [0, 8], sizes = [8, 8], strides = [1, 1]} : vector<8x32xf32> to vector<8x8xf32>
    %57 = vector.extract_strided_slice %29 {offsets = [0, 8], sizes = [8, 8], strides = [1, 1]} : vector<8x32xf32> to vector<8x8xf32>
    %58 = tpu.transpose %57, [1, 0] : vector<8x8xf32> -> vector<8x8xf32>
    %cst_25 = arith.constant dense<0.000000e+00> : vector<8x8xf32>
    %59 = tpu.matmul %56, %58, %cst_25 {dimension_numbers = #tpu.dot_dimension_numbers<[1], [0], [0], [1], [0, 0, 1, 1], [], []>} : vector<8x8xf32>, vector<8x8xf32>, vector<8x8xf32> -> vector<8x8xf32>
    %cst_26 = arith.constant 0.353553385 : f32
    %60 = vector.broadcast %cst_26 : f32 to vector<8x8xf32>
    %61 = arith.mulf %59, %60 : vector<8x8xf32>
    %cst_27 = arith.constant 0.000000e+00 : f32
    %62 = vector.broadcast %cst_27 : f32 to vector<8x8xf32>
    %63 = arith.cmpf oeq, %3, %62 : vector<8x8xf32>
    %cst_28 = arith.constant -1.000000e+09 : f32
    %64 = vector.broadcast %cst_28 : f32 to vector<8x8xf32>
    %65 = arith.select %63, %64, %61 : vector<8x8xi1>, vector<8x8xf32>
    %cst_29 = arith.constant dense<0xFF800000> : vector<8xf32>
    %66 = vector.multi_reduction <maximumf>, %65, %cst_29 [1] : vector<8x8xf32> to vector<8xf32>
    %67 = vector.shape_cast %66 : vector<8xf32> to vector<8x1xf32>
    %68 = vector.broadcast %67 : vector<8x1xf32> to vector<8x8xf32>
    %69 = arith.subf %65, %68 : vector<8x8xf32>
    %70 = math.exp %69 : vector<8x8xf32>
    %cst_30 = arith.constant dense<0.000000e+00> : vector<8xf32>
    %71 = vector.multi_reduction <add>, %70, %cst_30 [1] : vector<8x8xf32> to vector<8xf32>
    %72 = vector.shape_cast %71 : vector<8xf32> to vector<8x1xf32>
    %73 = vector.broadcast %72 : vector<8x1xf32> to vector<8x8xf32>
    %74 = arith.divf %70, %73 : vector<8x8xf32>
    %75 = vector.extract_strided_slice %30 {offsets = [0, 8], sizes = [8, 8], strides = [1, 1]} : vector<8x32xf32> to vector<8x8xf32>
    %cst_31 = arith.constant dense<0.000000e+00> : vector<8x8xf32>
    %76 = tpu.matmul %74, %75, %cst_31 {dimension_numbers = #tpu.dot_dimension_numbers<[1], [0], [0], [1], [0, 0, 1, 1], [], []>} : vector<8x8xf32>, vector<8x8xf32>, vector<8x8xf32> -> vector<8x8xf32>
    %c8 = arith.constant 8 : index
    %c0_32 = arith.constant 0 : index
    %77 = vector.load %arg5[%c8, %c0_32] : memref<32x32xf32, #tpu.memory_space<vmem>>, vector<8x32xf32>
    %cst_33 = arith.constant dense<0.000000e+00> : vector<8x32xf32>
    %78 = tpu.matmul %76, %77, %cst_33 {dimension_numbers = #tpu.dot_dimension_numbers<[1], [0], [0], [1], [0, 0, 1, 1], [], []>} : vector<8x8xf32>, vector<8x32xf32>, vector<8x32xf32> -> vector<8x32xf32>
    %79 = arith.addf %55, %78 : vector<8x32xf32>
    %80 = vector.extract_strided_slice %28 {offsets = [0, 16], sizes = [8, 8], strides = [1, 1]} : vector<8x32xf32> to vector<8x8xf32>
    %81 = vector.extract_strided_slice %29 {offsets = [0, 16], sizes = [8, 8], strides = [1, 1]} : vector<8x32xf32> to vector<8x8xf32>
    %82 = tpu.transpose %81, [1, 0] : vector<8x8xf32> -> vector<8x8xf32>
    %cst_34 = arith.constant dense<0.000000e+00> : vector<8x8xf32>
    %83 = tpu.matmul %80, %82, %cst_34 {dimension_numbers = #tpu.dot_dimension_numbers<[1], [0], [0], [1], [0, 0, 1, 1], [], []>} : vector<8x8xf32>, vector<8x8xf32>, vector<8x8xf32> -> vector<8x8xf32>
    %cst_35 = arith.constant 0.353553385 : f32
    %84 = vector.broadcast %cst_35 : f32 to vector<8x8xf32>
    %85 = arith.mulf %83, %84 : vector<8x8xf32>
    %cst_36 = arith.constant 0.000000e+00 : f32
    %86 = vector.broadcast %cst_36 : f32 to vector<8x8xf32>
    %87 = arith.cmpf oeq, %3, %86 : vector<8x8xf32>
    %cst_37 = arith.constant -1.000000e+09 : f32
    %88 = vector.broadcast %cst_37 : f32 to vector<8x8xf32>
    %89 = arith.select %87, %88, %85 : vector<8x8xi1>, vector<8x8xf32>
    %cst_38 = arith.constant dense<0xFF800000> : vector<8xf32>
    %90 = vector.multi_reduction <maximumf>, %89, %cst_38 [1] : vector<8x8xf32> to vector<8xf32>
    %91 = vector.shape_cast %90 : vector<8xf32> to vector<8x1xf32>
    %92 = vector.broadcast %91 : vector<8x1xf32> to vector<8x8xf32>
    %93 = arith.subf %89, %92 : vector<8x8xf32>
    %94 = math.exp %93 : vector<8x8xf32>
    %cst_39 = arith.constant dense<0.000000e+00> : vector<8xf32>
    %95 = vector.multi_reduction <add>, %94, %cst_39 [1] : vector<8x8xf32> to vector<8xf32>
    %96 = vector.shape_cast %95 : vector<8xf32> to vector<8x1xf32>
    %97 = vector.broadcast %96 : vector<8x1xf32> to vector<8x8xf32>
    %98 = arith.divf %94, %97 : vector<8x8xf32>
    %99 = vector.extract_strided_slice %30 {offsets = [0, 16], sizes = [8, 8], strides = [1, 1]} : vector<8x32xf32> to vector<8x8xf32>
    %cst_40 = arith.constant dense<0.000000e+00> : vector<8x8xf32>
    %100 = tpu.matmul %98, %99, %cst_40 {dimension_numbers = #tpu.dot_dimension_numbers<[1], [0], [0], [1], [0, 0, 1, 1], [], []>} : vector<8x8xf32>, vector<8x8xf32>, vector<8x8xf32> -> vector<8x8xf32>
    %c16 = arith.constant 16 : index
    %c0_41 = arith.constant 0 : index
    %101 = vector.load %arg5[%c16, %c0_41] : memref<32x32xf32, #tpu.memory_space<vmem>>, vector<8x32xf32>
    %cst_42 = arith.constant dense<0.000000e+00> : vector<8x32xf32>
    %102 = tpu.matmul %100, %101, %cst_42 {dimension_numbers = #tpu.dot_dimension_numbers<[1], [0], [0], [1], [0, 0, 1, 1], [], []>} : vector<8x8xf32>, vector<8x32xf32>, vector<8x32xf32> -> vector<8x32xf32>
    %103 = arith.addf %79, %102 : vector<8x32xf32>
    %104 = vector.extract_strided_slice %28 {offsets = [0, 24], sizes = [8, 8], strides = [1, 1]} : vector<8x32xf32> to vector<8x8xf32>
    %105 = vector.extract_strided_slice %29 {offsets = [0, 24], sizes = [8, 8], strides = [1, 1]} : vector<8x32xf32> to vector<8x8xf32>
    %106 = tpu.transpose %105, [1, 0] : vector<8x8xf32> -> vector<8x8xf32>
    %cst_43 = arith.constant dense<0.000000e+00> : vector<8x8xf32>
    %107 = tpu.matmul %104, %106, %cst_43 {dimension_numbers = #tpu.dot_dimension_numbers<[1], [0], [0], [1], [0, 0, 1, 1], [], []>} : vector<8x8xf32>, vector<8x8xf32>, vector<8x8xf32> -> vector<8x8xf32>
    %cst_44 = arith.constant 0.353553385 : f32
    %108 = vector.broadcast %cst_44 : f32 to vector<8x8xf32>
    %109 = arith.mulf %107, %108 : vector<8x8xf32>
    %cst_45 = arith.constant 0.000000e+00 : f32
    %110 = vector.broadcast %cst_45 : f32 to vector<8x8xf32>
    %111 = arith.cmpf oeq, %3, %110 : vector<8x8xf32>
    %cst_46 = arith.constant -1.000000e+09 : f32
    %112 = vector.broadcast %cst_46 : f32 to vector<8x8xf32>
    %113 = arith.select %111, %112, %109 : vector<8x8xi1>, vector<8x8xf32>
    %cst_47 = arith.constant dense<0xFF800000> : vector<8xf32>
    %114 = vector.multi_reduction <maximumf>, %113, %cst_47 [1] : vector<8x8xf32> to vector<8xf32>
    %115 = vector.shape_cast %114 : vector<8xf32> to vector<8x1xf32>
    %116 = vector.broadcast %115 : vector<8x1xf32> to vector<8x8xf32>
    %117 = arith.subf %113, %116 : vector<8x8xf32>
    %118 = math.exp %117 : vector<8x8xf32>
    %cst_48 = arith.constant dense<0.000000e+00> : vector<8xf32>
    %119 = vector.multi_reduction <add>, %118, %cst_48 [1] : vector<8x8xf32> to vector<8xf32>
    %120 = vector.shape_cast %119 : vector<8xf32> to vector<8x1xf32>
    %121 = vector.broadcast %120 : vector<8x1xf32> to vector<8x8xf32>
    %122 = arith.divf %118, %121 : vector<8x8xf32>
    %123 = vector.extract_strided_slice %30 {offsets = [0, 24], sizes = [8, 8], strides = [1, 1]} : vector<8x32xf32> to vector<8x8xf32>
    %cst_49 = arith.constant dense<0.000000e+00> : vector<8x8xf32>
    %124 = tpu.matmul %122, %123, %cst_49 {dimension_numbers = #tpu.dot_dimension_numbers<[1], [0], [0], [1], [0, 0, 1, 1], [], []>} : vector<8x8xf32>, vector<8x8xf32>, vector<8x8xf32> -> vector<8x8xf32>
    %c24 = arith.constant 24 : index
    %c0_50 = arith.constant 0 : index
    %125 = vector.load %arg5[%c24, %c0_50] : memref<32x32xf32, #tpu.memory_space<vmem>>, vector<8x32xf32>
    %cst_51 = arith.constant dense<0.000000e+00> : vector<8x32xf32>
    %126 = tpu.matmul %124, %125, %cst_51 {dimension_numbers = #tpu.dot_dimension_numbers<[1], [0], [0], [1], [0, 0, 1, 1], [], []>} : vector<8x8xf32>, vector<8x32xf32>, vector<8x32xf32> -> vector<8x32xf32>
    %127 = arith.addf %103, %126 : vector<8x32xf32>
    %128 = arith.addf %1, %127 : vector<8x32xf32>
    %c0_52 = arith.constant 0 : index
    %c0_53 = arith.constant 0 : index
    %c0_54 = arith.constant 0 : index
    %129 = vector.load %arg6[%c0_52, %c0_53, %c0_54] : memref<1x8x32xf32, #tpu.memory_space<vmem>>, vector<1x8x32xf32>
    %130 = vector.shape_cast %129 : vector<1x8x32xf32> to vector<8x32xf32>
    %131 = vector.shape_cast %128 : vector<8x32xf32> to vector<1x8x32xf32>
    tpu.vector_store %arg6[%c0_52, %c0_53, %c0_54], %131 {strides = array<i32>} : memref<1x8x32xf32, #tpu.memory_space<vmem>>, vector<1x8x32xf32>,
    return
  }
  func.func @transform_0(%arg0: i32) -> (i32, i32, i32) {
    %c0_i32 = arith.constant 0 : i32
    %c0_i32_0 = arith.constant 0 : i32
    %c0_i32_1 = arith.constant 0 : i32
    return %arg0, %c0_i32, %c0_i32_0 : i32, i32, i32
  }
  func.func @transform_1(%arg0: i32) -> (i32, i32, i32, i32) {
    %c0_i32 = arith.constant 0 : i32
    %c0_i32_0 = arith.constant 0 : i32
    %c0_i32_1 = arith.constant 0 : i32
    %c0_i32_2 = arith.constant 0 : i32
    return %arg0, %c0_i32, %c0_i32_0, %c0_i32_1 : i32, i32, i32, i32
  }
  func.func @transform_2(%arg0: i32) -> i32 {
    %c0_i32 = arith.constant 0 : i32
    %c0_i32_0 = arith.constant 0 : i32
    return %c0_i32 : i32
  }
  func.func @transform_3(%arg0: i32) -> (i32, i32) {
    %c0_i32 = arith.constant 0 : i32
    %c0_i32_0 = arith.constant 0 : i32
    %c0_i32_1 = arith.constant 0 : i32
    return %c0_i32, %c0_i32_0 : i32, i32
  }
  func.func @transform_4(%arg0: i32) -> (i32, i32) {
    %c0_i32 = arith.constant 0 : i32
    %c0_i32_0 = arith.constant 0 : i32
    %c0_i32_1 = arith.constant 0 : i32
    return %c0_i32, %c0_i32_0 : i32, i32
  }
  func.func @transform_5(%arg0: i32) -> (i32, i32, i32) {
    %c0_i32 = arith.constant 0 : i32
    %c0_i32_0 = arith.constant 0 : i32
    %c0_i32_1 = arith.constant 0 : i32
    return %arg0, %c0_i32, %c0_i32_0 : i32, i32, i32
  }
}

</mosaic_0001>

<bundles_post_ra>
// kernel: tpu_custom_call.1
= control target key start
LH: loop header
LB: loop body
LE: loop exit
PB: predicated region body
PF: predicated region fallthrough
CT: control target
= control target key end

     0   :  { %s2453_s0 = inlined_call_operand.hbm [shape: f32[2,8,32], index: 0, kind: input, shape index: {}]   ;;  %s2454_s1 = inlined_call_operand.hbm [shape: f32[2,1,8,8], index: 1, kind: input, shape index: {}]   ;;  %s2455_s2 = inlined_call_operand.vmem [shape: f32[2], index: 2, kind: input, shape index: {}]   ;;  %s2456_s3 = inlined_call_operand.hbm [shape: f32[32,96], index: 3, kind: input, shape index: {}]   ;;  %s2457_s4 = inlined_call_operand.hbm [shape: f32[32,32], index: 4, kind: input, shape index: {}]   ;;  %s2458_s5 = inlined_call_operand.hbm [shape: f32[2,8,32], index: 5, kind: output, shape index: {}]  }
   0x1   :  { %2463 = sst [smem:[#allocation19_spill]] %s2455_s2 }
   0x2   :  { %2464 = sst [smem:[#allocation20_spill]] %s2456_s3 }
   0x3   :  { %10 = vsyncpa [#allocation3], 0 }
   0x4   :  { %12 = vsyncpa [#allocation3 + $0x1], 0 }
   0x5   :  { %13 = vsyncpa [#allocation7], 0 }
   0x6   :  { %15 = vsyncpa [#allocation7 + $0x1], 0 }
   0x7   :  { %16 = vsyncpa [#allocation5], 0 }
   0x8   :  { %17 = vsyncpa [#allocation11], 0 }
   0x9   :  { %18 = vsyncpa [#allocation4], 0 }
   0xa   :  { %20 = vsyncpa [#allocation4 + $0x1], 0  ;;  %s2063_s18 = smov 0   ;;  %s2065_s19 = smov 0  }
   0xb   :  { %s2067_s20 = smov 0   ;;  %s2069_s21 = smov 0  }
   0xc LB: > { %s2084_s22 = sadd.s32 4294967295, %s2009_s21   ;;  %s1533_s23 = sadd.s32 4294967294, %s2009_s21   ;;  %s2009_s21 = sphi %s2069_s21, %s2489_s21   ;;  %s2005_s20 = sphi %s2067_s20, %s2488_s20   ;;  %s2001_s19 = sphi %s2065_s19, %s2487_s19   ;;  %s1997_s18 = sphi %s2063_s18, %s2486_s18  }
   0xd   : > { %p46_p0 = scmp.ne.s32.totalorder %s2001_s19, %s1997_s18  ;;  %p2459_p1 = scmp.eq.s32.totalorder %s2084_s22, 0 }
   0xe   : > { %p165_p3 = scmp.eq.s32.totalorder %s1533_s23, 1  ;;  %p1534_p5 = scmp.ge.s32.totalorder %s2009_s21, 1 }
   0xf   : > { %p2093_p4 = por %p2459_p1, %p46_p0  ;;  %p172_p7 = scmp.lt.s32.totalorder %s2009_s21, 3 }
  0x10   : > { %p2098_p6 = por %p165_p3, %p46_p0  ;;  %s2011_s27 = smov [#allocation9]  }
  0x11   : > { %s2465_s24 = scalar_select %p2093_p4, 1, 0 }
  0x12   : > { %s2466_s25 = scalar_select %p2098_p6, 1, 0 }
  0x13   : > { %p2103_p8 = pnand %p1534_p5, %p172_p7  ;;  %s195_s28 = sshll.u32 %s2011_s27, 4  ;;  %s2107_s28 = int_to_ptr.vmem [resolvable:$true] %s195_s28 }
  0x14   : > { %s2468_s2 = sld [smem:[#allocation19_spill]]  ;;  %s2012_s8 = smov [#allocation10]  }
  0x15   : > { %s2467_s26 = scalar_select %p2103_p8, 1, 0 }
  0x16   : > { %p1696_p9 = pneg %p2103_p8  ;;  %s2123_s9 = sshll.u32 %s2012_s8, 4  ;;  %s209_s9 = int_to_ptr.vmem [resolvable:$true] %s2123_s9 }
  0x17   : > { %s2470_s3 = sld [smem:[#allocation20_spill]] }
  0x18   : > { %p2117_p11 = pnand %p1696_p9, %p2459_p1 }
  0x1a   : > { %s185_s6 = sshll.u32 %s2468_s2, 4  ;;  %p2133_p13 = pneg %p2117_p11  ;;  %s2121_s6 = int_to_ptr.vmem [resolvable:$true] %s185_s6 }
  0x1d   : > { %s1796_s12 = scalar_lea.hbm %s2470_s3, 512 }
  0x1e   : > { %p1797_p12 = scmp.ne.s32.totalorder %s2470_s3, %s1796_s12  ;;  %p1803_p5 = scmp.lt.u32.totalorder %s1796_s12, %s2470_s3 }
  0x20   : > { %p1799_p0 = pnand %p2133_p13, %p1797_p12 }
  0x22   : > { %p1800_p3 = pneg %p1799_p0 }
  0x24   : > { %p1805_p7 = pnand %p1803_p5, %p1800_p3 }
  0x26   : > { %1808 = shalt.err (!%p1805_p7)
}
  0x27   : > { %s1809_s23 = scalar_lea.vmem %s2107_s28, 512  ;;  %p1817_p2 = scmp.lt.s32.totalorder %s2107_s28, %s2107_s28 }
  0x28   : > { %p1810_p9 = scmp.ne.s32.totalorder %s2107_s28, %s1809_s23  ;;  %p1818_p6 = scmp.lt.s32.totalorder %s1809_s23, %s1809_s23 }
  0x2a   : > { %p1812_p10 = pnand %p1810_p9, %p2133_p13  ;;  %p1819_p12 = por %p1818_p6, %p1817_p2 }
  0x2c   : > { %p1813_p1 = pneg %p1812_p10 }
  0x2e   : > { %p1820_p0 = pnand %p1819_p12, %p1813_p1 }
  0x30   : > { %1823 = shalt.err (!%p1820_p0)
}
  0x31   : > { %s2013_s27 = smov 128   ;;  %s2014_s29 = smov 8  }
  0x32   : > { %1702 = dma.hbm_to_vmem [thread:$0]  (!%p2117_p11), %s2470_s3, 512, %s2107_s28, [#allocation7], %s2013_s27, %s2013_s27, %s2014_s29  }
  0x33   : > { %s1824_s10 = scalar_lea.vmem %s2121_s6, 16  ;;  %p1832_p10 = scmp.lt.s32.totalorder %s2121_s6, %s2121_s6 }
  0x34   : > { %p1825_p2 = scmp.ne.s32.totalorder %s2121_s6, %s1824_s10  ;;  %p1833_p3 = scmp.lt.s32.totalorder %s1824_s10, %s1824_s10 }
  0x36   : > { %p1827_p1 = pnand %p1825_p2, %p2133_p13  ;;  %p1834_p5 = por %p1833_p3, %p1832_p10 }
  0x38   : > { %p1828_p6 = pneg %p1827_p1 }
  0x3a   : > { %p1835_p7 = pnand %p1834_p5, %p1828_p6 }
  0x3c   : > { %1838 = shalt.err (!%p1835_p7)
}
  0x3d   : > { %s2015_s11 = smov [#allocation8]   ;;  %s1839_s13 = scalar_lea.hbm %s2457_s4, 512 }
  0x3e   : > { %1699 = dma.vmem_to_smem (!%p2117_p11), %s2121_s6, 16, %s2015_s11, [#allocation5]  }
  0x3f   : > { %p1840_p9 = scmp.ne.s32.totalorder %s2457_s4, %s1839_s13  ;;  %p1846_p2 = scmp.lt.u32.totalorder %s1839_s13, %s2457_s4 }
  0x41   : > { %p1842_p12 = pnand %p1840_p9, %p2133_p13 }
  0x43   : > { %p1843_p0 = pneg %p1842_p12 }
  0x45   : > { %p1848_p1 = pnand %p1846_p2, %p1843_p0 }
  0x47   : > { %1851 = shalt.err (!%p1848_p1)
}
  0x48   : > { %s1852_s30 = scalar_lea.vmem %s209_s9, 512  ;;  %p1860_p5 = scmp.lt.s32.totalorder %s209_s9, %s209_s9 }
  0x49   : > { %p1853_p6 = scmp.ne.s32.totalorder %s209_s9, %s1852_s30  ;;  %p1861_p7 = scmp.lt.s32.totalorder %s1852_s30, %s1852_s30 }
  0x4b   : > { %p1855_p10 = pnand %p1853_p6, %p2133_p13  ;;  %p1862_p4 = por %p1861_p7, %p1860_p5 }
  0x4d   : > { %p1856_p3 = pneg %p1855_p10 }
  0x4f   : > { %p1863_p8 = pnand %p1862_p4, %p1856_p3 }
  0x51   : > { %1866 = shalt.err (!%p1863_p8)
}
  0x52   : > { %1705 = dma.hbm_to_vmem [thread:$0]  (!%p2117_p11), %s2457_s4, 512, %s209_s9, [#allocation11], %s2013_s27, %s2013_s27, %s2014_s29  }
  0x53   : > { %s2189_s15 = sadd.s32 1, %s2009_s21   ;;  %s33_s10 = sadd.s32 1, %s2005_s20 }
  0x54   : > { %s30_s7 = ssub.s32 %s2009_s21, %s2189_s15  ;;  %p40_p8 = scmp.ne.s32.totalorder %s2005_s20, %s2001_s19 }
  0x55   : > { %p31_p4 = scmp.eq.s32.totalorder %s30_s7, 0  ;;  %p41_p13 = scmp.eq.s32.totalorder %s2009_s21, 0 }
  0x56   : > { %p1720_p9 = scmp.lt.s32.totalorder %s2009_s21, 2  ;;  %p2472_p0 = scmp.eq.s32.totalorder %s2084_s22, 1 }
  0x57   : > { %s2199_s11 = scalar_select %p31_p4, %s2005_s20, %s33_s10  }
  0x58   : > { %p42_p12 = por %p41_p13, %p40_p8  ;;  %p2203_p2 = por %p2472_p0, %p40_p8 }
  0x59   : > { %s222_s12 = sand.u32 1, %s2005_s20   ;;  %s1540_s13 = sshll.u32 %s2009_s21, 7 }
  0x5a   : > { %s2473_s28 = scalar_select %p2203_p2, 1, 0 }
  0x5b   : > { %s2209_s9 = sshll.u32 %s222_s12, 3  ;;  %s2214_s14 = scalar_lea.hbm %s2453_s0, %s1540_s13 }
  0x5c   : > { %s226_s16 = scalar_lea.vmem [#allocation2], %s2209_s9  ;;  %p2217_p11 = pnand %p1720_p9, %p42_p12 }
  0x5d   : > { %s233_s17 = sshll.u32 %s226_s16, 4  ;;  %s2226_s8 = scalar_lea.hbm %s2454_s1, %s1540_s13  ;;  %s2221_s17 = int_to_ptr.vmem [resolvable:$true] %s233_s17 }
  0x5e   : > { %s223_s7 = scalar_lea.sflag [#allocation3], %s222_s12  ;;  %s1867_s10 = scalar_lea.hbm %s2214_s14, 128 }
  0x5f   : > { %p1868_p1 = scmp.ne.s32.totalorder %s2214_s14, %s1867_s10  ;;  %p1869_p6 = pneg %p2217_p11 }
  0x60   : > { %s1872_s16 = scalar_lea.hbm %s2453_s0, 256  ;;  %p1873_p5 = scmp.lt.u32.totalorder %s2214_s14, %s2453_s0 }
  0x61   : > { %p1870_p10 = pnand %p1869_p6, %p1868_p1  ;;  %p1874_p7 = scmp.lt.u32.totalorder %s1872_s16, %s1867_s10 }
  0x62   : > { %p1876_p8 = scmp.lt.u32.totalorder %s1867_s10, %s2214_s14 }
  0x63   : > { %p1871_p3 = pneg %p1870_p10  ;;  %p1875_p4 = por %p1874_p7, %p1873_p5 }
  0x65   : > { %p1877_p13 = por %p1876_p8, %p1875_p4 }
  0x67   : > { %p1878_p9 = pnand %p1877_p13, %p1871_p3 }
  0x69   : > { %1881 = shalt.err (!%p1878_p9)
}
  0x6a   : > { %s1882_s12 = scalar_lea.vmem %s2221_s17, 128  ;;  %s2016_s13 = smov [#allocation2]  }
  0x6b   : > { %p1883_p12 = scmp.ne.s32.totalorder %s2221_s17, %s1882_s12  ;;  %s1887_s30 = sshll.u32 %s2016_s13, 4  ;;  %s1888_s30 = int_to_ptr.vmem [resolvable:$false] %s1887_s30 }
  0x6c   : > { %s1889_s2 = scalar_lea.vmem %s1888_s30, 256  ;;  %p1890_p10 = scmp.lt.s32.totalorder %s2221_s17, %s1888_s30 }
  0x6d   : > { %p1885_p0 = pnand %p1883_p12, %p1869_p6  ;;  %p1891_p5 = scmp.lt.s32.totalorder %s1889_s2, %s1882_s12 }
  0x6f   : > { %p1886_p1 = pneg %p1885_p0  ;;  %p1892_p7 = por %p1891_p5, %p1890_p10 }
  0x71   : > { %p1893_p4 = pnand %p1892_p7, %p1886_p1 }
  0x73   : > { %1896 = shalt.err (!%p1893_p4)
}
  0x74   : > { %1709 = dma.hbm_to_vmem [thread:$0]  (!%p2217_p11), %s2214_s14, 128, %s2221_s17, %s223_s7  }
  0x75   : > { %s240_s3 = sand.u32 1, %s2009_s21   ;;  %s244_s6 = scalar_lea.vmem [#allocation6], %s2209_s9 }
  0x76   : > { %s251_s10 = sshll.u32 %s244_s6, 4  ;;  %s241_s27 = scalar_lea.sflag [#allocation7], %s240_s3  ;;  %s252_s10 = int_to_ptr.vmem [resolvable:$true] %s251_s10 }
  0x77   : > { %s1897_s29 = scalar_lea.hbm %s2226_s8, 128  ;;  %s1902_s13 = scalar_lea.hbm %s2454_s1, 256 }
  0x78   : > { %p1898_p3 = scmp.ne.s32.totalorder %s2226_s8, %s1897_s29  ;;  %p1903_p9 = scmp.lt.u32.totalorder %s2226_s8, %s2454_s1 }
  0x79   : > { %p1904_p12 = scmp.lt.u32.totalorder %s1902_s13, %s1897_s29  ;;  %p1906_p1 = scmp.lt.u32.totalorder %s1897_s29, %s2226_s8 }
  0x7a   : > { %p1900_p8 = pnand %p1898_p3, %p1869_p6 }
  0x7b   : > { %p1905_p0 = por %p1904_p12, %p1903_p9 }
  0x7c   : > { %p1901_p13 = pneg %p1900_p8 }
  0x7d   : > { %p1907_p10 = por %p1906_p1, %p1905_p0 }
  0x7f   : > { %p1908_p5 = pnand %p1907_p10, %p1901_p13 }
  0x81   : > { %1911 = shalt.err (!%p1908_p5)
}
  0x82   : > { %s1912_s9 = scalar_lea.vmem %s252_s10, 128  ;;  %s2017_s14 = smov [#allocation6]  }
  0x83   : > { %p1913_p7 = scmp.ne.s32.totalorder %s252_s10, %s1912_s9  ;;  %s1917_s17 = sshll.u32 %s2017_s14, 4  ;;  %s1918_s17 = int_to_ptr.vmem [resolvable:$false] %s1917_s17 }
  0x84   : > { %s1919_s7 = scalar_lea.vmem %s1918_s17, 256  ;;  %p1920_p8 = scmp.lt.s32.totalorder %s252_s10, %s1918_s17 }
  0x85   : > { %p1915_p4 = pnand %p1913_p7, %p1869_p6  ;;  %p1921_p2 = scmp.lt.s32.totalorder %s1919_s7, %s1912_s9 }
  0x87   : > { %p1916_p3 = pneg %p1915_p4  ;;  %p1922_p9 = por %p1921_p2, %p1920_p8 }
  0x89   : > { %p1923_p12 = pnand %p1922_p9, %p1916_p3 }
  0x8b   : > { %1926 = shalt.err (!%p1923_p12)
}
  0x8c   : > { %1712 = dma.hbm_to_vmem [thread:$0]  (!%p2217_p11), %s2226_s8, 128, %s252_s10, %s241_s27  }
  0x8d   : > { %p2475_p13 = scmp.ne.s32.totalorder %s2467_s26, 0 }
  0x8e   : > { %s2277_s3 = sand.u32 (!%p2475_p13), 1, %s2001_s19   ;;  %p2476_p2 = scmp.ne.s32.totalorder (!%p2475_p13), %s2465_s24, 0 }
  0x8f   : > { %260 = sbr.rel (%p2475_p13) target bundleno = 3077 (0xc05), region = 40  ;;  %s2280_s6 = sshll.u32 (!%p2475_p13), %s2277_s3, 3 }
  0x90   : > { %s263_s29 = scalar_lea.sflag (!%p2475_p13), [#allocation3], %s2277_s3  ;;  %s266_s16 = scalar_lea.vmem (!%p2475_p13), [#allocation2], %s2280_s6 }
  0x96   : > { %1972 = dma.done.wait (%p2476_p2), %s263_s29, 128  }
  0x97   : > { %1974 = vsyncadd (%p2476_p2), %s263_s29, 4294967168  ;;  %s271_s26 = sand.u32 1, %s2084_s22   ;;  %s275_s8 = scalar_lea.vmem [#allocation6], %s2280_s6 }
  0x98   : > { %s272_s23 = scalar_lea.sflag [#allocation7], %s271_s26 }
  0x99   : > { %1976 = dma.done.wait (%p2476_p2), %s272_s23, 128  }
  0x9a   : > { %1978 = vsyncadd (%p2476_p2), %s272_s23, 4294967168  ;;  %p2477_p11 = scmp.eq.s32.totalorder %s2084_s22, 0 }
  0x9c   : > { %1980 = dma.done.wait (%p2477_p11), [#allocation5], 16   ;;  %p2478_p6 = pmov %p2477_p11 }
  0x9e   : > { %1982 = vsyncadd (%p2478_p6), [#allocation5], 4294967280  ;;  %p2479_p0 = pmov %p2478_p6 }
  0xa0   : > { %1984 = dma.done.wait (%p2479_p0), [#allocation7], 512   ;;  %p2480_p1 = pmov %p2479_p0 }
  0xa1   : > { %p2481_p10 = pmov %p2479_p0 }
  0xa2   : > { %1986 = vsyncadd (%p2480_p1), [#allocation7], 4294966784 }
  0xa3   : > { %1988 = dma.done.wait (%p2481_p10), [#allocation11], 512   ;;  %p2482_p5 = pmov %p2479_p0 }
  0xa5   : > { %1990 = vsyncadd (%p2482_p5), [#allocation11], 4294966784 }
  0xa6   : > { %292 = sfence }
  0xa7   : > { %v2306_v0 = vld [vmem:[%s266_s16] sm:$0xff]  ;;  %vm322_vm0 = vcmask 261120   ;;  %v351_v9 = vld [vmem:[#allocation9 + $0x10] sm:$0xff]  ;;  %v2018_v10 = vmov 0.0|0.0   ;;  %v352_v12 = vld [vmem:[#allocation9 + $0x18] sm:$0xff]  ;;  %vm2019_vm1 = vmmov 0  }
  0xa8   : > { %v323_v1 = vsel %vm322_vm0, %v2306_v0, 0.0  ;;  %v349_v7 = vld [vmem:[#allocation9] sm:$0xff]  ;;  %v350_v8 = vld [vmem:[#allocation9 + $0x8] sm:$0xff]  ;;  %1672 = vmatprep.subr.bf16.mxu0 %v2018_v10  ;;  %v2020_v13 = vmov 0.0   ;;  %v1676_v14 = vpack.c.bf16 %v352_v12, %v351_v9  ;;  %s340_s24 = sld [smem:[#allocation8]]  ;;  %s1550_s10 = sld [smem:[#allocation8 + $0x1]] }
  0xa9   : > { %324 = vadd.xlane.f32.xlu0 %v323_v1  ;;  %v1673_v11 = vpack.c.bf16 %v350_v8, %v349_v7  ;;  %1609 = vmatprep.mubr.msk.f32.mxu0 %vm2019_vm1, %v2020_v13  ;;  %s2021_s27 = smov 120   ;;  %s2022_s12 = smov 96   ;;  %vm429_vm4 = vcmask 64512   ;;  %v2339_v34 = vld [vmem:[%s275_s8] sm:$0xff]  ;;  %v762_v55 = vld [vmem:[#allocation10 + $0x8] sm:$0xff]  ;;  %v594_v1 = vld [vmem:[#allocation10] sm:$0xff] }
  0xaa   : > { %1612 = vmatprep.subr.mxu1 %v2020_v13  ;;  %1614 = vmatprep.mubr.msk.f32.mxu1 %vm2019_vm1, %v2020_v13  ;;  %s2023_s13 = smov 88   ;;  %vm505_vm5 = vcmp.eq.f32.partialorder %v2339_v34, 0.0  ;;  %s2024_s30 = smov 56  }
  0xab   : > { %1674 = vmatpush3.bf16.msra.mxu0 %v1673_v11  ;;  %s2025_s2 = smov 64   ;;  %s2026_s9 = smov 80  }
  0xac   : > { %1675 = vmatprep.subr.bf16.mxu0 %v2018_v10  ;;  %s2027_s14 = smov 112   ;;  %s2028_s17 = smov 48  }
  0xad   : > { %s2029_s7 = smov 104   ;;  %s2030_s29 = smov 72  }
  0xae   : > { %v341_v23 = vstv %s340_s24  ;;  %v347_v26 = vstv %s1550_s10  ;;  %s2031_s16 = smov 40   ;;  %s1569_s26 = sshll.u32 %s2084_s22, 7 }
  0xaf   : > { %1677 = vmatpush3.bf16.msra.mxu0 %v1676_v14  ;;  %s319_s23 = scalar_lea.vmem [#allocation12], %s2280_s6  ;;  %p2483_p4 = scmp.ne.s32.totalorder %s2473_s28, 0 }
  0xb0   : > { %1622 = vmatprep.subr.mxu0 %v2020_v13  ;;  %s1409_s8 = sshll.u32 %s319_s23, 4  ;;  %s2032_s6 = smov [#allocation12]   ;;  %s2410_s8 = int_to_ptr.vmem [resolvable:$true] %s1409_s8 }
  0xb1   : > { %s1927_s22 = scalar_lea.vmem %s2410_s8, 128 }
  0xb2   : > { %p1928_p7 = scmp.ne.s32.totalorder %s2410_s8, %s1927_s22 }
  0xb4   : > { %p1929_p3 = pnand %p1928_p7, %p2483_p4 }
  0xb6   : > { %p1930_p8 = pneg %p1929_p3 }
 0x136   : > { %v325_v2 = vpop.xlane.xlu0 %324 }
 0x137   : > { %v326_v3 = vmul.f32 0.03125, %v325_v2 }
 0x139   : > { %v327_v4 = vsub.f32 %v2306_v0, %v326_v3 }
 0x13b   : > { %v328_v5 = vmul.f32 %v327_v4, %v327_v4  ;;  %v342_v24 = vmul.f32 %v341_v23, %v327_v4 }
 0x13d   : > { %v329_v6 = vsel %vm322_vm0, %v328_v5, 0.0 }
 0x13e   : > { %330 = vadd.xlane.f32.xlu0 %v329_v6 }
 0x1cb   : > { %v331_v15 = vpop.xlane.xlu0 %330 }
 0x1cc   : > { %v332_v16 = vmul.f32 0.032258064, %v331_v15 }
 0x1ce   : > { %1776 = vrsqrt.f32 %v332_v16  ;;  %vm335_vm2 = vcmp.eq.f32.partialorder %v332_v16, inf  ;;  %v338_v19 = vand.u32 2147483648, %v332_v16  ;;  %vm337_vm3 = vcmp.eq.f32.partialorder %v332_v16, 0.0 }
 0x1d8   : > { %v1777_v17 = vpop.eup %1776 }
 0x1d9   : > { %v334_v18 = vmul.f32 %v1777_v17, %v332_v16 }
 0x1db   : > { %v336_v20 = vsel %vm335_vm2, %v332_v16, %v334_v18 }
 0x1dc   : > { %v339_v21 = vsel %vm337_vm3, %v338_v19, %v336_v20 }
 0x1dd   : > { %v343_v22 = vadd.f32 1e-06, %v339_v21 }
 0x1df   : > { %1778 = vrcp.f32 %v343_v22 }
 0x1e9   : > { %v1779_v25 = vpop.eup %1778 }
 0x1ea   : > { %v345_v27 = vmul.f32 %v1779_v25, %v342_v24 }
 0x1ec   : > { %v348_v28 = vadd.f32 %v347_v26, %v345_v27 }
 0x1ee   : > { %1610 = vmatmul.mubr.msk.f32.vlgmr.msra.gmra.mrb[0].mxu0 %vm322_vm0, %v348_v28 }
 0x1ef   : > { %1624 = vmatprep.mubr.msk.f32.mxu0 %vm2019_vm1, %v2020_v13 }
 0x2c1   : > { %v2321_v29 = vpop.f32.mrb[0].mxu0 }
 0x2c2   : > { %595 = vrot.lane.b32.xlu0 %v2321_v29, %s2021_s27  ;;  %427 = vrot.lane.b32.xlu1 %v2321_v29, %s2022_s12  ;;  %v1611_v30 = vpop.f32.mrb[1].mxu0  ;;  %s2408_s27 = scalar_lea.hbm %s2458_s5, %s1569_s26  ;;  %s1396_s12 = scalar_lea.sflag [#allocation4], %s2277_s3 }
 0x2c6   : > { %597 = vrot.lane.b32.xlu1 %v2321_v29, %s2023_s13  ;;  %s1931_s13 = sshll.u32 %s2032_s6, 4  ;;  %s1932_s13 = int_to_ptr.vmem [resolvable:$false] %s1931_s13 }
 0x2c7   : > { %p1934_p9 = scmp.lt.s32.totalorder %s2410_s8, %s1932_s13 }
 0x334   : > { %v428_v31 = vpop.permute.xlu1 %427  ;;  %v596_v33 = vpop.permute.xlu0 %595 }
 0x335   : > { %1613 = vmatpush3.xpose.msk.msra.mxu1 %vm429_vm4, %v428_v31  ;;  %v1076_v31 = vld [vmem:[#allocation10 + $0x10] sm:$0xff] }
 0x336   : > { %1617 = vmatprep.subr.mxu1 %v2020_v13 }
 0x338   : > { %1615 = vmatmul.mubr.msk.f32.vlgmr.msra.gmra.mrb[0].mxu1 %vm429_vm4, %v2321_v29  ;;  %v598_v32 = vpop.permute.xlu1 %597 }
 0x339   : > { %1623 = vmatpush3.xpose.msk.msra.mxu0 %vm429_vm4, %v598_v32  ;;  %1619 = vmatprep.mubr.msk.f32.mxu1 %vm2019_vm1, %v2020_v13 }
 0x33a   : > { %1632 = vmatprep.subr.mxu0 %v2020_v13 }
 0x33c   : > { %1625 = vmatmul.mubr.msk.f32.vlgmr.msra.gmra.mrb[2].mxu0 %vm429_vm4, %v596_v33 }
 0x33d   : > { %1634 = vmatprep.mubr.msk.f32.mxu0 %vm2019_vm1, %v2020_v13  ;;  %1633 = vmatpush3.msra.mxu0 %v762_v55 }
 0x33e   : > { %1642 = vmatprep.subr.mxu0 %v2020_v13 }
 0x40b   : > { %v500_v35 = vpop.f32.mrb[0].mxu1 }
 0x40c   : > { %v504_v36 = vmul.f32 0.35355338, %v500_v35  ;;  %v1616_v37 = vpop.f32.mrb[1].mxu1 }
 0x40e   : > { %v506_v38 = vsel %vm505_vm5, -1e+09, %v504_v36 }
 0x40f   : > { %v669_v39 = vpop.f32.mrb[2].mxu0  ;;  %v507_v40 = vsel %vm429_vm4, %v506_v38, -inf }
 0x410   : > { %v673_v41 = vmul.f32 0.35355338, %v669_v39  ;;  %508 = vmax.xlane.f32.xlu1 %v507_v40  ;;  %v1626_v42 = vpop.f32.mrb[3].mxu0 }
 0x412   : > { %v674_v43 = vsel %vm505_vm5, -1e+09, %v673_v41 }
 0x413   : > { %v675_v44 = vsel %vm429_vm4, %v674_v43, -inf }
 0x414   : > { %676 = vmax.xlane.f32.xlu0 %v675_v44 }
 0x42a   : > { %686 = vrot.lane.b32.xlu0 %v2321_v29, %s2024_s30  ;;  %s1933_s30 = scalar_lea.vmem %s1932_s13, 256 }
 0x42b   : > { %p1935_p12 = scmp.lt.s32.totalorder %s1933_s30, %s1927_s22 }
 0x42d   : > { %p1936_p13 = por %p1935_p12, %p1934_p9 }
 0x42f   : > { %p1937_p2 = pnand %p1936_p13, %p1930_p8 }
 0x49d   : > { %v509_v45 = vpop.xlane.xlu1 %508 }
 0x49e   : > { %v510_v46 = vsub.f32 %v506_v38, %v509_v45 }
 0x4a0   : > { %v511_v47 = vmul.f32 1.442695, %v510_v46 }
 0x4a1   : > { %v677_v48 = vpop.xlane.xlu0 %676 }
 0x4a2   : > { %1780 = vpow2.f32 %v511_v47  ;;  %v678_v49 = vsub.f32 %v674_v43, %v677_v48 }
 0x4a4   : > { %v679_v50 = vmul.f32 1.442695, %v678_v49 }
 0x4a5   : > { %v687_v61 = vpop.permute.xlu0 %686 }
 0x4a6   : > { %1782 = vpow2.f32 %v679_v50 }
 0x4ac   : > { %v1781_v51 = vpop.eup %1780 }
 0x4ad   : > { %v513_v52 = vsel %vm429_vm4, %v1781_v51, 0.0 }
 0x4ae   : > { %514 = vadd.xlane.f32.xlu1 %v513_v52 }
 0x4b0   : > { %v1783_v53 = vpop.eup %1782 }
 0x4b1   : > { %v681_v54 = vsel %vm429_vm4, %v1783_v53, 0.0 }
 0x4b2   : > { %682 = vadd.xlane.f32.xlu1 %v681_v54 }
 0x4c3   : > { %518 = vrot.lane.b32.xlu1 %v2321_v29, %s2025_s2 }
 0x4c7   : > { %911 = vrot.lane.b32.xlu1 %v2321_v29, %s2026_s9 }
 0x4cb   : > { %909 = vrot.lane.b32.xlu1 %v2321_v29, %s2027_s14 }
 0x53b   : > { %v515_v56 = vpop.xlane.xlu1 %514 }
 0x53c   : > { %1784 = vrcp.f32 %v515_v56 }
 0x53f   : > { %v683_v57 = vpop.xlane.xlu1 %682 }
 0x540   : > { %1786 = vrcp.f32 %v683_v57 }
 0x543   : > { %v519_v58 = vpop.permute.xlu1 %518 }
 0x544   : > { %1618 = vmatpush3.msra.mxu1 %v519_v58 }
 0x545   : > { %1627 = vmatprep.subr.mxu1 %v2020_v13 }
 0x546   : > { %v1785_v59 = vpop.eup %1784 }
 0x547   : > { %v517_v60 = vmul.f32 %v1785_v59, %v1781_v51  ;;  %v912_v4 = vpop.permute.xlu1 %911 }
 0x549   : > { %1620 = vmatmul.mubr.msk.f32.vlgmr.msra.gmra.mrb[2].mxu1 %vm429_vm4, %v517_v60 }
 0x54a   : > { %v1787_v62 = vpop.eup %1786  ;;  %1628 = vmatpush3.msra.mxu1 %v687_v61  ;;  %1629 = vmatprep.mubr.msk.f32.mxu1 %vm2019_vm1, %v2020_v13 }
 0x54b   : > { %v685_v63 = vmul.f32 %v1787_v62, %v1783_v53  ;;  %1637 = vmatprep.subr.mxu1 %v2020_v13  ;;  %v910_v7 = vpop.permute.xlu1 %909 }
 0x54d   : > { %1630 = vmatmul.mubr.msk.f32.vlgmr.msra.gmra.mrb[4].mxu1 %vm429_vm4, %v685_v63 }
 0x54e   : > { %1639 = vmatprep.mubr.msk.f32.mxu1 %vm2019_vm1, %v2020_v13  ;;  %1638 = vmatpush3.msra.mxu1 %v594_v1 }
 0x54f   : > { %1647 = vmatprep.subr.mxu1 %v2020_v13 }
 0x61c   : > { %v590_v2 = vpop.f32.mrb[2].mxu1 }
 0x61d   : > { %v1621_v3 = vpop.f32.mrb[3].mxu1  ;;  %1640 = vmatmul.mubr.msk.f32.vlgmr.msra.gmra.mrb[6].mxu1 %vm429_vm4, %v590_v2 }
 0x61e   : > { %1649 = vmatprep.mubr.msk.f32.mxu1 %vm2019_vm1, %v2020_v13 }
 0x620   : > { %v758_v5 = vpop.f32.mrb[4].mxu1 }
 0x621   : > { %v1631_v6 = vpop.f32.mrb[5].mxu1  ;;  %1635 = vmatmul.mubr.msk.f32.vlgmr.msra.gmra.mrb[4].mxu0 %vm429_vm4, %v758_v5 }
 0x622   : > { %1643 = vmatpush3.xpose.msk.msra.mxu0 %vm429_vm4, %v912_v4  ;;  %1644 = vmatprep.mubr.msk.f32.mxu0 %vm2019_vm1, %v2020_v13 }
 0x623   : > { %1652 = vmatprep.subr.mxu0 %v2020_v13 }
 0x625   : > { %1645 = vmatmul.mubr.msk.f32.vlgmr.msra.gmra.mrb[6].mxu0 %vm429_vm4, %v910_v7 }
 0x626   : > { %1654 = vmatprep.mubr.msk.f32.mxu0 %vm2019_vm1, %v2020_v13  ;;  %1653 = vmatpush3.msra.mxu0 %v1076_v31 }
 0x627   : > { %1662 = vmatprep.subr.mxu0 %v2020_v13 }
 0x6f0   : > { %v905_v8 = vpop.f32.mrb[6].mxu1 }
 0x6f1   : > { %v1641_v9 = vpop.f32.mrb[7].mxu1 }
 0x6f4   : > { %v832_v10 = vpop.f32.mrb[4].mxu0 }
 0x6f5   : > { %v906_v11 = vadd.f32 %v905_v8, %v832_v10  ;;  %v1636_v12 = vpop.f32.mrb[5].mxu0 }
 0x6f8   : > { %v983_v14 = vpop.f32.mrb[6].mxu0 }
 0x6f9   : > { %v987_v15 = vmul.f32 0.35355338, %v983_v14  ;;  %v1646_v16 = vpop.f32.mrb[7].mxu0 }
 0x6fb   : > { %v988_v17 = vsel %vm505_vm5, -1e+09, %v987_v15 }
 0x6fc   : > { %v989_v18 = vsel %vm429_vm4, %v988_v17, -inf }
 0x6fd   : > { %990 = vmax.xlane.f32.xlu1 %v989_v18 }
 0x70e   : > { %1000 = vrot.lane.b32.xlu1 %v2321_v29, %s2028_s17 }
 0x712   : > { %1151 = vrot.lane.b32.xlu1 %v2321_v29, %s2029_s7 }
 0x78a   : > { %v991_v19 = vpop.xlane.xlu1 %990 }
 0x78b   : > { %v992_v20 = vsub.f32 %v988_v17, %v991_v19 }
 0x78d   : > { %v993_v21 = vmul.f32 1.442695, %v992_v20 }
 0x78e   : > { %v1001_v22 = vpop.permute.xlu1 %1000 }
 0x78f   : > { %1788 = vpow2.f32 %v993_v21  ;;  %1648 = vmatpush3.msra.mxu1 %v1001_v22 }
 0x790   : > { %1657 = vmatprep.subr.mxu1 %v2020_v13 }
 0x792   : > { %v1152_v30 = vpop.permute.xlu1 %1151 }
 0x799   : > { %v1789_v23 = vpop.eup %1788 }
 0x79a   : > { %v995_v24 = vsel %vm429_vm4, %v1789_v23, 0.0 }
 0x79b   : > { %996 = vadd.xlane.f32.xlu0 %v995_v24 }
 0x7b1   : > { %1153 = vrot.lane.b32.xlu0 %v2321_v29, %s2030_s29 }
 0x828   : > { %v997_v25 = vpop.xlane.xlu0 %996 }
 0x829   : > { %1790 = vrcp.f32 %v997_v25 }
 0x82c   : > { %v1154_v28 = vpop.permute.xlu0 %1153 }
 0x833   : > { %v1791_v26 = vpop.eup %1790 }
 0x834   : > { %v999_v27 = vmul.f32 %v1791_v26, %v1789_v23 }
 0x836   : > { %1650 = vmatmul.mubr.msk.f32.vlgmr.msra.gmra.mrb[8].mxu1 %vm429_vm4, %v999_v27 }
 0x837   : > { %1658 = vmatpush3.xpose.msk.msra.mxu1 %vm429_vm4, %v1154_v28  ;;  %1659 = vmatprep.mubr.msk.f32.mxu1 %vm2019_vm1, %v2020_v13 }
 0x838   : > { %1667 = vmatprep.subr.mxu1 %v2020_v13 }
 0x83a   : > { %1660 = vmatmul.mubr.msk.f32.vlgmr.msra.gmra.mrb[10].mxu1 %vm429_vm4, %v1152_v30 }
 0x83b   : > { %1669 = vmatprep.mubr.msk.f32.mxu1 %vm2019_vm1, %v2020_v13 }
 0x909   : > { %v1072_v32 = vpop.f32.mrb[8].mxu1 }
 0x90a   : > { %v1651_v33 = vpop.f32.mrb[9].mxu1  ;;  %1655 = vmatmul.mubr.msk.f32.vlgmr.msra.gmra.mrb[8].mxu0 %vm429_vm4, %v1072_v32 }
 0x90b   : > { %1664 = vmatprep.mubr.msk.f32.mxu0 %vm2019_vm1, %v2020_v13  ;;  %v1318_v13 = vld [vmem:[#allocation10 + $0x18] sm:$0xff] }
 0x90c   : > { %1668 = vmatpush3.msra.mxu1 %v1318_v13 }
 0x90d   : > { %v1225_v35 = vpop.f32.mrb[10].mxu1 }
 0x90e   : > { %v1229_v36 = vmul.f32 0.35355338, %v1225_v35  ;;  %v1661_v37 = vpop.f32.mrb[11].mxu1 }
 0x910   : > { %v1230_v38 = vsel %vm505_vm5, -1e+09, %v1229_v36 }
 0x911   : > { %v1231_v39 = vsel %vm429_vm4, %v1230_v38, -inf }
 0x912   : > { %1232 = vmax.xlane.f32.xlu1 %v1231_v39 }
 0x99f   : > { %v1233_v40 = vpop.xlane.xlu1 %1232 }
 0x9a0   : > { %v1234_v41 = vsub.f32 %v1230_v38, %v1233_v40 }
 0x9a2   : > { %v1235_v42 = vmul.f32 1.442695, %v1234_v41 }
 0x9a4   : > { %1792 = vpow2.f32 %v1235_v42 }
 0x9ae   : > { %v1793_v43 = vpop.eup %1792 }
 0x9af   : > { %v1237_v44 = vsel %vm429_vm4, %v1793_v43, 0.0 }
 0x9b0   : > { %1238 = vadd.xlane.f32.xlu0 %v1237_v44 }
 0x9c6   : > { %1242 = vrot.lane.b32.xlu0 %v2321_v29, %s2031_s16 }
 0x9dd   : > { %v1146_v34 = vpop.f32.mrb[8].mxu0 }
 0x9de   : > { %v1150_v45 = vadd.f32 %v1146_v34, %v906_v11  ;;  %v1656_v46 = vpop.f32.mrb[9].mxu0 }
 0xa3d   : > { %v1239_v47 = vpop.xlane.xlu0 %1238 }
 0xa3e   : > { %1794 = vrcp.f32 %v1239_v47 }
 0xa41   : > { %v1243_v48 = vpop.permute.xlu0 %1242 }
 0xa42   : > { %1663 = vmatpush3.msra.mxu0 %v1243_v48 }
 0xa48   : > { %v1795_v49 = vpop.eup %1794 }
 0xa49   : > { %v1241_v50 = vmul.f32 %v1795_v49, %v1793_v43 }
 0xa4b   : > { %1665 = vmatmul.mubr.msk.f32.vlgmr.msra.gmra.mrb[10].mxu0 %vm429_vm4, %v1241_v50 }
 0xb1e   : > { %v1314_v51 = vpop.f32.mrb[10].mxu0 }
 0xb1f   : > { %v1666_v52 = vpop.f32.mrb[11].mxu0  ;;  %1670 = vmatmul.mubr.msk.f32.vlgmr.msra.gmra.mrb[12].mxu1 %vm429_vm4, %v1314_v51 }
 0xbf2   : > { %v1388_v29 = vpop.f32.mrb[12].mxu1 }
 0xbf3   : > { %v1392_v53 = vadd.f32 %v1388_v29, %v1150_v45  ;;  %v1671_v54 = vpop.f32.mrb[13].mxu1 }
 0xbf5   : > { %v1393_v55 = vadd.f32 %v1392_v53, %v2306_v0 }
 0xbf7   : > { %1394 = vst.msk [vmem:[%s319_s23] sm:$0xff] %vm322_vm0, %v1393_v55 }
 0xbf8   : > { %1940 = shalt.err (!%p1937_p2)
}
 0xbf9   : > { %s1941_s3 = scalar_lea.hbm %s2408_s27, 128  ;;  %s1945_s14 = scalar_lea.hbm %s2458_s5, 256 }
 0xbfa   : > { %p1942_p11 = scmp.ne.s32.totalorder %s2408_s27, %s1941_s3  ;;  %p1946_p1 = scmp.lt.u32.totalorder %s2408_s27, %s2458_s5 }
 0xbfb   : > { %p1947_p10 = scmp.lt.u32.totalorder %s1945_s14, %s1941_s3  ;;  %p1949_p7 = scmp.lt.u32.totalorder %s1941_s3, %s2408_s27 }
 0xbfc   : > { %p1943_p6 = pnand %p1942_p11, %p2483_p4 }
 0xbfd   : > { %p1948_p5 = por %p1947_p10, %p1946_p1 }
 0xbfe   : > { %p1944_p0 = pneg %p1943_p6 }
 0xbff   : > { %p1950_p3 = por %p1949_p7, %p1948_p5 }
 0xc01   : > { %p1951_p8 = pnand %p1950_p3, %p1944_p0 }
 0xc03   : > { %1954 = shalt.err (!%p1951_p8)
}
 0xc04   : > { %1694 = dma.vmem_to_hbm [thread:$0]  (%p2483_p4), %s2410_s8, 128, %s2408_s27, %s1396_s12  }
 0xc05 PF: > { %s1421_s29 = sand.u32 1, %s1997_s18   ;;  %p2484_p9 = scmp.ne.s32.totalorder %s2466_s25, 0 }
 0xc06   : > { %p2485_p12 = scmp.ge.s32.totalorder %s2009_s21, 2  ;;  %s1422_s16 = scalar_lea.sflag [#allocation4], %s1421_s29 }
 0xc08   : > { %p1714_p13 = pnand %p2485_p12, %p2484_p9 }
 0xc0a   : > { %1992 = dma.done.wait (!%p1714_p13), %s1422_s16, 128  }
 0xc0b   : > { %1994 = vsyncadd (!%p1714_p13), %s1422_s16, 4294967168  ;;  %p23_p2 = scmp.ge.s32.totalorder %s2189_s15, 4   ;;  %s2486_s18 = smov %s2001_s19 }
 0xc0c   : > { %s2487_s19 = smov %s2005_s20  ;;  %s2488_s20 = smov %s2199_s11 }
 0xc0d   : > { %s2489_s21 = smov %s2189_s15  ;;  %25 = sbr.rel (!%p23_p2) target bundleno = 12 (0xc), region = 111 }
 0xc14   :  { %1427 = vsyncpa [#allocation3], 1 }
 0xc15   :  { %1429 = vsyncpa [#allocation3 + $0x1], 1 }
 0xc16   :  { %1430 = vsyncpa [#allocation7], 1 }
 0xc17   :  { %1432 = vsyncpa [#allocation7 + $0x1], 1 }
 0xc18   :  { %1433 = vsyncpa [#allocation11], 1 }
 0xc19   :  { %1434 = vsyncpa [#allocation4], 1 }
 0xc1a   :  { %1436 = vsyncpa [#allocation4 + $0x1], 1 }
 0xc1b   :  { %1437 = vsyncpa [#allocation5], 1 }
 0xc1c   :  { %1439 = vsyncpa [#allocation5 + $0x1], 1 }

</bundles_post_ra>
